<compile_context>
chip_gen: v6e
topology: v6e:2x2x1
jax: 0.10.0
libtpu: 0.0.40
codegen_flags: <defaults>
</compile_context>

<pallas_src>
import functools

import jax
import jax.numpy as jnp
from jax import lax
from jax.experimental import pallas as pl
from jax.experimental.pallas import tpu as pltpu


def _round_up(x, m):
    return ((x + m - 1) // m) * m


def _apply_act(y, act):
    if act == "relu":
        return jnp.maximum(y, 0.0)
    if act == "tanh":
        return jnp.tanh(y)
    return y


# ---------------------------------------------------------------------------
# Pallas kernels
# ---------------------------------------------------------------------------
def _mm_kernel_1k(a_ref, w_ref, b_ref, o_ref, *, act):
    # Single K tile: no scratch accumulator, no k-loop bookkeeping.
    y = jnp.dot(a_ref[0], w_ref[0], preferred_element_type=jnp.float32) + b_ref[...]
    o_ref[0] = _apply_act(y, act).astype(o_ref.dtype)


def _mm_kernel_nk(a_ref, w_ref, b_ref, o_ref, acc_ref, *, act):
    k = pl.program_id(3)

    @pl.when(k == 0)
    def _():
        acc_ref[...] = jnp.zeros_like(acc_ref)

    acc_ref[...] += jnp.dot(a_ref[0], w_ref[0], preferred_element_type=jnp.float32)

    @pl.when(k == pl.num_programs(3) - 1)
    def _():
        o_ref[0] = _apply_act(acc_ref[...] + b_ref[...], act).astype(o_ref.dtype)


def _emit_stats(y, s_ref, q_ref):
    ps = jnp.sum(y, axis=0, keepdims=True)
    qs = jnp.sum(y * y, axis=0, keepdims=True)
    # Write the (1, tn) partial broadcast over 8 sublanes (dense f32 store);
    # the wrapper only reads row 0 of each 8-row slab.
    s_ref[...] = jnp.broadcast_to(ps, s_ref.shape)
    q_ref[...] = jnp.broadcast_to(qs, q_ref.shape)


def _write_stats(y, s_ref, q_ref, i, *, m_valid, tm, nm):
    """Per-M-tile partial (sum, sum_sq); mask padded rows only where needed."""
    if nm * tm == m_valid:                      # no padded rows at all
        _emit_stats(y, s_ref, q_ref)
    elif nm == 1:                               # single tile -> always mask
        row = lax.broadcasted_iota(jnp.int32, y.shape, 0)
        _emit_stats(jnp.where(row < m_valid, y, 0.0), s_ref, q_ref)
    else:                                       # mask only the last M tile
        @pl.when(i == nm - 1)
        def _():
            row = lax.broadcasted_iota(jnp.int32, y.shape, 0) + i * tm
            _emit_stats(jnp.where(row < m_valid, y, 0.0), s_ref, q_ref)

        @pl.when(i != nm - 1)
        def _():
            _emit_stats(y, s_ref, q_ref)


def _mm_stats_kernel_1k(a_ref, w_ref, b_ref, o_ref, s_ref, q_ref, *,
                        act, m_valid, tm, nm):
    i = pl.program_id(1)
    y = jnp.dot(a_ref[0], w_ref[0], preferred_element_type=jnp.float32) + b_ref[...]
    y = _apply_act(y, act)
    o_ref[0] = y.astype(o_ref.dtype)
    _write_stats(y, s_ref, q_ref, i, m_valid=m_valid, tm=tm, nm=nm)


def _mm_stats_kernel_nk(a_ref, w_ref, b_ref, o_ref, s_ref, q_ref, acc_ref, *,
                        act, m_valid, tm, nm):
    i = pl.program_id(1)
    k = pl.program_id(3)

    @pl.when(k == 0)
    def _():
        acc_ref[...] = jnp.zeros_like(acc_ref)

    acc_ref[...] += jnp.dot(a_ref[0], w_ref[0], preferred_element_type=jnp.float32)

    @pl.when(k == pl.num_programs(3) - 1)
    def _():
        y = _apply_act(acc_ref[...] + b_ref[...], act)
        o_ref[0] = y.astype(o_ref.dtype)
        _write_stats(y, s_ref, q_ref, i, m_valid=m_valid, tm=tm, nm=nm)


def _affine_kernel(x_ref, sc_ref, sh_ref, o_ref, *, act):
    y = x_ref[...].astype(jnp.float32) * sc_ref[...] + sh_ref[...]
    o_ref[...] = _apply_act(y, act).astype(o_ref.dtype)


def _affine_res_kernel(x_ref, sc_ref, sh_ref, r_ref, o_ref):
    y = (x_ref[...].astype(jnp.float32) * sc_ref[...] + sh_ref[...]
         + r_ref[...].astype(jnp.float32))
    o_ref[...] = y.astype(o_ref.dtype)


# ---------------------------------------------------------------------------
# Pallas call wrappers
# ---------------------------------------------------------------------------
def matmul_bias(a, w, b, act=None, stats=False):
    """Batched matmul: a (P, M, K), w (P, K, N), b (N,) -> act(a @ w + b) bf16.

    bf16 MXU inputs, f32 accumulation. If stats=True (requires act=None), also
    returns per-channel (sum, sum_of_squares) over all P*M valid rows (f32).
    """
    assert not (stats and act is not None), "stats must be taken pre-activation"
    P, M, K = a.shape
    N = w.shape[-1]

    # Single K / N tile whenever they fit (launch/pipeline overhead dominates at
    # these layer shapes); working set stays well under every chip's scoped VMEM.
    tm = min(256, _round_up(M, 16))
    tk = min(2560, _round_up(K, 128))
    tn = min(512, _round_up(N, 128))
    Mp, Kp, Np = _round_up(M, tm), _round_up(K, tk), _round_up(N, tn)
    nm, nn, nk = Mp // tm, Np // tn, Kp // tk

    a_p = jnp.pad(a.astype(jnp.bfloat16), ((0, 0), (0, Mp - M), (0, Kp - K)))
    w_p = jnp.pad(w.astype(jnp.bfloat16), ((0, 0), (0, Kp - K), (0, Np - N)))
    b_p = jnp.pad(b.astype(jnp.float32).reshape(1, N), ((0, 0), (0, Np - N)))

    grid = (P, nm, nn, nk)                               # M before N, K innermost
    a_spec = pl.BlockSpec((1, tm, tk), lambda p, i, j, k: (p, i, k))
    w_spec = pl.BlockSpec((1, tk, tn), lambda p, i, j, k: (p, k, j))
    b_spec = pl.BlockSpec((1, tn), lambda p, i, j, k: (0, j))
    y_spec = pl.BlockSpec((1, tm, tn), lambda p, i, j, k: (p, i, j))
    params = pltpu.CompilerParams(
        dimension_semantics=("parallel", "parallel", "parallel", "arbitrary"))

    if not stats:
        if nk == 1:
            kernel, scratch = functools.partial(_mm_kernel_1k, act=act), []
        else:
            kernel = functools.partial(_mm_kernel_nk, act=act)
            scratch = [pltpu.VMEM((tm, tn), jnp.float32)]
        y = pl.pallas_call(
            kernel, grid=grid,
            in_specs=[a_spec, w_spec, b_spec], out_specs=y_spec,
            out_shape=jax.ShapeDtypeStruct((P, Mp, Np), jnp.bfloat16),
            scratch_shapes=scratch, compiler_params=params,
        )(a_p, w_p, b_p)
        return y[:, :M, :N]

    # Stats path: per-(phase, M-tile) partial sums as independent outputs
    # (no cross-iteration scratch -> all non-K axes stay parallel).
    st_shape = jax.ShapeDtypeStruct((P * nm * 8, Np), jnp.float32)
    st_spec = pl.BlockSpec((8, tn), lambda p, i, j, k: (p * nm + i, j))
    if nk == 1:
        kernel = functools.partial(_mm_stats_kernel_1k, act=act,
                                   m_valid=M, tm=tm, nm=nm)
        scratch = []
    else:
        kernel = functools.partial(_mm_stats_kernel_nk, act=act,
                                   m_valid=M, tm=tm, nm=nm)
        scratch = [pltpu.VMEM((tm, tn), jnp.float32)]
    y, s8, q8 = pl.pallas_call(
        kernel, grid=grid,
        in_specs=[a_spec, w_spec, b_spec],
        out_specs=(y_spec, st_spec, st_spec),
        out_shape=(jax.ShapeDtypeStruct((P, Mp, Np), jnp.bfloat16),
                   st_shape, st_shape),
        scratch_shapes=scratch, compiler_params=params,
    )(a_p, w_p, b_p)
    s = s8[::8, :N].sum(axis=0, keepdims=True)           # reduce over (phase, M-tile)
    q = q8[::8, :N].sum(axis=0, keepdims=True)
    return y[:, :M, :N], s, q


def _affine_call(x, scale, shift, act=None, res=None):
    """Tiled elementwise y = act(x*scale + shift [+ res]); bf16 I/O, f32 math."""
    M, C = x.shape
    tm = min(512, _round_up(M, 16))
    Mp, Cp = _round_up(M, tm), _round_up(C, 128)

    x_p = jnp.pad(x.astype(jnp.bfloat16), ((0, Mp - M), (0, Cp - C)))
    sc = jnp.pad(scale.astype(jnp.float32).reshape(1, C), ((0, 0), (0, Cp - C)))
    sh = jnp.pad(shift.astype(jnp.float32).reshape(1, C), ((0, 0), (0, Cp - C)))

    full_spec = pl.BlockSpec((tm, Cp), lambda i: (i, 0))
    row_spec = pl.BlockSpec((1, Cp), lambda i: (0, 0))

    if res is None:
        kernel = functools.partial(_affine_kernel, act=act)
        in_specs = [full_spec, row_spec, row_spec]
        args = (x_p, sc, sh)
    else:
        r_p = jnp.pad(res.astype(jnp.bfloat16), ((0, Mp - M), (0, Cp - C)))
        kernel = _affine_res_kernel
        in_specs = [full_spec, row_spec, row_spec, full_spec]
        args = (x_p, sc, sh, r_p)

    y = pl.pallas_call(
        kernel, grid=(Mp // tm,),
        in_specs=in_specs, out_specs=full_spec,
        out_shape=jax.ShapeDtypeStruct((Mp, Cp), jnp.bfloat16),
        compiler_params=pltpu.CompilerParams(dimension_semantics=("parallel",)),
    )(*args)
    return y[:M, :C]


# ---------------------------------------------------------------------------
# Conv / ConvTranspose / BatchNorm (im2col + interleave glue in plain JAX)
# ---------------------------------------------------------------------------
def im2col(x, K, stride, pad):
    """x: (N, H, W, C) bf16 -> patches (N*Ho*Wo, K*K*C) ordered (kh, kw, c)."""
    N, H, W, C = x.shape
    xp = jnp.pad(x, ((0, 0), (pad, pad), (pad, pad), (0, 0)))
    Ho = (H + 2 * pad - K) // stride + 1
    Wo = (W + 2 * pad - K) // stride + 1
    cols = [xp[:, kh:kh + stride * Ho:stride, kw:kw + stride * Wo:stride, :]
            for kh in range(K) for kw in range(K)]
    cols = jnp.concatenate(cols, axis=-1)                  # (N, Ho, Wo, K*K*C)
    return cols.reshape(N * Ho * Wo, K * K * C), (N, Ho, Wo)


def conv2d(x, w, b, stride, pad, act=None, stats=False):
    """x: NHWC bf16, w: (Cout, Cin, K, K) (PyTorch layout), b: (Cout,)."""
    Cout, Cin, K, _ = w.shape
    cols, (N, Ho, Wo) = im2col(x, K, stride, pad)
    w2 = jnp.transpose(w, (2, 3, 1, 0)).reshape(K * K * Cin, Cout)
    if stats:
        y, s, q = matmul_bias(cols[None], w2[None], b, act=act, stats=True)
        return y[0].reshape(N, Ho, Wo, Cout), s, q
    y = matmul_bias(cols[None], w2[None], b, act=act)
    return y[0].reshape(N, Ho, Wo, Cout)


def conv_transpose2d(x, wt, b, act=None, stats=False):
    """nn.ConvTranspose2d(kernel_size=4, stride=2, padding=1) via sub-pixel
    decomposition: one 2x2 stride-1 conv per output phase, all 4 phases merged
    into one batched pallas_call. x: NHWC bf16, wt: (Cin, Cout, 4, 4)."""
    N, H, W, Cin = x.shape
    _, Cout, K, _ = wt.shape
    s = 2                                                   # stride (fixed)
    xp = jnp.pad(x, ((0, 0), (1, 1), (1, 1), (0, 0)))
    a_list, w_list = [], []
    for ph in range(s):
        for pw in range(s):
            xs = xp[:, ph:ph + H + 1, pw:pw + W + 1, :]     # (N, H+1, W+1, Cin)
            kh_idx = jnp.array([K - 1 - ph - s * j for j in range(K // s)])
            kw_idx = jnp.array([K - 1 - pw - s * j for j in range(K // s)])
            wsub = wt[:, :, kh_idx, :][:, :, :, kw_idx]     # (Cin, Cout, 2, 2)
            wsub = jnp.transpose(wsub, (2, 3, 0, 1)).reshape((K // s) ** 2 * Cin, Cout)
            cols, _ = im2col(xs, K // s, 1, 0)              # (N*H*W, 4*Cin)
            a_list.append(cols)
            w_list.append(wsub)
    a = jnp.stack(a_list, axis=0)                           # (4, N*H*W, 4*Cin)
    wm = jnp.stack(w_list, axis=0)                          # (4, 4*Cin, Cout)

    if stats:
        y, s_sum, q_sum = matmul_bias(a, wm, b, act=act, stats=True)
    else:
        y = matmul_bias(a, wm, b, act=act)

    y = y.reshape(s, s, N, H, W, Cout)
    y = jnp.transpose(y, (2, 3, 0, 4, 1, 5)).reshape(N, s * H, s * W, Cout)
    if stats:
        return y, s_sum, q_sum
    return y


def batchnorm_affine(x, bn, s, q, act=None, residual=None, eps=1e-5):
    """Training-mode BatchNorm2d (batch stats, biased variance) over NHWC,
    using per-channel (sum, sum_sq) already produced by the conv kernel."""
    N, H, W, C = x.shape
    m = float(N * H * W)
    mean = s / m                                            # (1, C)
    var = jnp.maximum(q / m - mean * mean, 0.0)             # clamp: no NaN rsqrt
    scale = bn["gamma"].reshape(1, C) * lax.rsqrt(var + eps)
    shift = bn["beta"].reshape(1, C) - mean * scale
    x2 = x.reshape(N * H * W, C)
    r2 = None if residual is None else residual.reshape(N * H * W, C)
    y2 = _affine_call(x2, scale.reshape(C), shift.reshape(C), act=act, res=r2)
    return y2.reshape(N, H, W, C)


# ---------------------------------------------------------------------------
# Generator: parameters + forward
# ---------------------------------------------------------------------------
def init_params(key, input_channels=3, output_channels=3, ngf=64,
                num_residual_blocks=3):
    keys = iter(jax.random.split(key, 128))

    def conv_p(cin, cout, k):
        return {"w": 0.05 * jax.random.normal(next(keys), (cout, cin, k, k), jnp.float32),
                "b": 0.02 * jax.random.normal(next(keys), (cout,), jnp.float32)}

    def convT_p(cin, cout, k):
        return {"w": 0.05 * jax.random.normal(next(keys), (cin, cout, k, k), jnp.float32),
                "b": 0.02 * jax.random.normal(next(keys), (cout,), jnp.float32)}

    def bn_p(c):
        return {"gamma": 1.0 + 0.1 * jax.random.normal(next(keys), (c,), jnp.float32),
                "beta": 0.1 * jax.random.normal(next(keys), (c,), jnp.float32)}

    return {
        "c1": conv_p(input_channels, ngf, 4),
        "c2": conv_p(ngf, ngf * 2, 4), "bn2": bn_p(ngf * 2),
        "c3": conv_p(ngf * 2, ngf * 4, 4), "bn3": bn_p(ngf * 4),
        "res": [
            {"c1": conv_p(ngf * 4, ngf * 4, 3), "bn1": bn_p(ngf * 4),
             "c2": conv_p(ngf * 4, ngf * 4, 3), "bn2": bn_p(ngf * 4)}
            for _ in range(num_residual_blocks)
        ],
        "t1": convT_p(ngf * 4, ngf * 2, 4), "bnu1": bn_p(ngf * 2),
        "t2": convT_p(ngf * 2, ngf, 4), "bnu2": bn_p(ngf),
        "t3": convT_p(ngf, output_channels, 4),
    }


def generator_forward(params, x_nchw):
    p = params
    x = jnp.transpose(x_nchw, (0, 2, 3, 1)).astype(jnp.bfloat16)    # NCHW -> NHWC

    # initial: Conv(s2)+ReLU -> Conv(s2)+BN+ReLU -> Conv(s2)+BN+ReLU
    x = conv2d(x, p["c1"]["w"], p["c1"]["b"], 2, 1, act="relu")
    x, s, q = conv2d(x, p["c2"]["w"], p["c2"]["b"], 2, 1, stats=True)
    x = batchnorm_affine(x, p["bn2"], s, q, act="relu")
    x, s, q = conv2d(x, p["c3"]["w"], p["c3"]["b"], 2, 1, stats=True)
    x = batchnorm_affine(x, p["bn3"], s, q, act="relu")

    # residual blocks: x + BN(Conv(ReLU(BN(Conv(x)))))
    for rb in p["res"]:
        h, s, q = conv2d(x, rb["c1"]["w"], rb["c1"]["b"], 1, 1, stats=True)
        h = batchnorm_affine(h, rb["bn1"], s, q, act="relu")
        h, s, q = conv2d(h, rb["c2"]["w"], rb["c2"]["b"], 1, 1, stats=True)
        x = batchnorm_affine(h, rb["bn2"], s, q, residual=x)

    # upsampling: ConvT(s2)+BN+ReLU (x2), ConvT(s2)+Tanh
    x, s, q = conv_transpose2d(x, p["t1"]["w"], p["t1"]["b"], stats=True)
    x = batchnorm_affine(x, p["bnu1"], s, q, act="relu")
    x, s, q = conv_transpose2d(x, p["t2"]["w"], p["t2"]["b"], stats=True)
    x = batchnorm_affine(x, p["bnu2"], s, q, act="relu")
    x = conv_transpose2d(x, p["t3"]["w"], p["t3"]["b"], act="tanh")

    return jnp.transpose(x, (0, 3, 1, 2)).astype(jnp.float32)       # NHWC -> NCHW


# ---------------------------------------------------------------------------
if __name__ == "__main__":
    key = jax.random.PRNGKey(0)
    pkey, xkey, tkey = jax.random.split(key, 3)

    # ---- numerical parity checks vs lax references (bf16 tolerances) ----
    k1, k2, k3, k4, k5, k6 = jax.random.split(tkey, 6)

    # 3x3 stride-1 pad-1 convolution
    xc = jax.random.normal(k1, (1, 6, 6, 8), jnp.float32)
    xc = xc.astype(jnp.bfloat16).astype(jnp.float32)         # same quantized input
    wc = 0.05 * jax.random.normal(k2, (16, 8, 3, 3), jnp.float32)
    bc = 0.05 * jax.random.normal(k3, (16,), jnp.float32)
    y_pl = conv2d(xc.astype(jnp.bfloat16), wc, bc, 1, 1).astype(jnp.float32)
    y_ref = lax.conv_general_dilated(
        xc, jnp.transpose(wc, (2, 3, 1, 0)), (1, 1), [(1, 1), (1, 1)],
        dimension_numbers=("NHWC", "HWIO", "NHWC")) + bc
    assert float(jnp.max(jnp.abs(y_pl - y_ref))) < 5e-2

    # ConvTranspose2d(kernel_size=4, stride=2, padding=1)
    xt = jax.random.normal(k4, (1, 4, 4, 8), jnp.float32)
    xt = xt.astype(jnp.bfloat16).astype(jnp.float32)
    wtT = 0.05 * jax.random.normal(k5, (8, 16, 4, 4), jnp.float32)   # (Cin, Cout, 4, 4)
    btT = 0.05 * jax.random.normal(k6, (16,), jnp.float32)
    y_pl = conv_transpose2d(xt.astype(jnp.bfloat16), wtT, btT).astype(jnp.float32)
    w_ref = jnp.transpose(wtT[:, :, ::-1, ::-1], (2, 3, 0, 1))       # HWIO, flipped
    y_ref = lax.conv_general_dilated(
        xt, w_ref, (1, 1), [(2, 2), (2, 2)], lhs_dilation=(2, 2),
        dimension_numbers=("NHWC", "HWIO", "NHWC")) + btT
    assert float(jnp.max(jnp.abs(y_pl - y_ref))) < 5e-2

    # ---- full generator forward ----
    params = init_params(pkey, input_channels=3, output_channels=3,
                         ngf=64, num_residual_blocks=3)
    x = jax.random.normal(xkey, (2, 3, 16, 16), jnp.float32)         # NCHW input

    fwd = jax.jit(functools.partial(generator_forward, params))
    y = jax.block_until_ready(fwd(x))

    assert y.shape == (2, 3, 16, 16), y.shape
    assert bool(jnp.all(jnp.isfinite(y)))
    assert bool(jnp.all(jnp.abs(y) <= 1.0 + 1e-6))                   # tanh output range
    print("KERNEL_OK")
</pallas_src>

<mosaic_0001>
module attributes {stable_mosaic.version = 11 : i64} {
  func.func @_mm_kernel_1k(%arg0: i32, %arg1: i32, %arg2: i32, %arg3: i32, %arg4: memref<1x48x128xbf16, #tpu.memory_space<vmem>>, %arg5: memref<1x128x128xbf16, #tpu.memory_space<vmem>>, %arg6: memref<1x128xf32, #tpu.memory_space<vmem>>, %arg7: memref<1x48x128xbf16, #tpu.memory_space<vmem>>) attributes {dimension_semantics = [#tpu.dimension_semantics<parallel>, #tpu.dimension_semantics<parallel>, #tpu.dimension_semantics<parallel>, #tpu.dimension_semantics<arbitrary>], iteration_bounds = array<i64: 1, 1, 1, 1>, scalar_prefetch = 0 : i64, scratch_operands = 0 : i64, tpu.core_type = #tpu.core_type<tc>, window_params = [{transform_indices = @transform_0, window_bounds = array<i64: 1, 48, 128>}, {transform_indices = @transform_1, window_bounds = array<i64: 1, 128, 128>}, {transform_indices = @transform_2, window_bounds = array<i64: 1, 128>}, {transform_indices = @transform_3, window_bounds = array<i64: 1, 48, 128>}]} {
    %c0 = arith.constant 0 : index
    %c0_0 = arith.constant 0 : index
    %c0_1 = arith.constant 0 : index
    %0 = vector.load %arg4[%c0, %c0_0, %c0_1] : memref<1x48x128xbf16, #tpu.memory_space<vmem>>, vector<1x48x128xbf16>
    %1 = vector.shape_cast %0 : vector<1x48x128xbf16> to vector<48x128xbf16>
    %c0_2 = arith.constant 0 : index
    %c0_3 = arith.constant 0 : index
    %c0_4 = arith.constant 0 : index
    %2 = vector.load %arg5[%c0_2, %c0_3, %c0_4] : memref<1x128x128xbf16, #tpu.memory_space<vmem>>, vector<1x128x128xbf16>
    %3 = vector.shape_cast %2 : vector<1x128x128xbf16> to vector<128x128xbf16>
    %cst = arith.constant dense<0.000000e+00> : vector<48x128xf32>
    %4 = tpu.matmul %1, %3, %cst {dimension_numbers = #tpu.dot_dimension_numbers<[1], [0], [0], [1], [0, 0, 1, 1], [], []>} : vector<48x128xbf16>, vector<128x128xbf16>, vector<48x128xf32> -> vector<48x128xf32>
    %c0_5 = arith.constant 0 : index
    %c0_6 = arith.constant 0 : index
    %5 = vector.load %arg6[%c0_5, %c0_6] : memref<1x128xf32, #tpu.memory_space<vmem>>, vector<1x128xf32>
    %6 = vector.broadcast %5 : vector<1x128xf32> to vector<48x128xf32>
    %7 = arith.addf %4, %6 : vector<48x128xf32>
    %8 = arith.truncf %7 : vector<48x128xf32> to vector<48x128xbf16>
    %c0_7 = arith.constant 0 : index
    %c0_8 = arith.constant 0 : index
    %c0_9 = arith.constant 0 : index
    %9 = vector.load %arg7[%c0_7, %c0_8, %c0_9] : memref<1x48x128xbf16, #tpu.memory_space<vmem>>, vector<1x48x128xbf16>
    %10 = vector.shape_cast %9 : vector<1x48x128xbf16> to vector<48x128xbf16>
    %11 = vector.shape_cast %8 : vector<48x128xbf16> to vector<1x48x128xbf16>
    tpu.vector_store %arg7[%c0_7, %c0_8, %c0_9], %11 {strides = array<i32>} : memref<1x48x128xbf16, #tpu.memory_space<vmem>>, vector<1x48x128xbf16>,
    return
  }
  func.func @transform_0(%arg0: i32, %arg1: i32, %arg2: i32, %arg3: i32) -> (i32, i32, i32) {
    %c0_i32 = arith.constant 0 : i32
    return %arg0, %arg1, %arg3 : i32, i32, i32
  }
  func.func @transform_1(%arg0: i32, %arg1: i32, %arg2: i32, %arg3: i32) -> (i32, i32, i32) {
    %c0_i32 = arith.constant 0 : i32
    return %arg0, %arg3, %arg2 : i32, i32, i32
  }
  func.func @transform_2(%arg0: i32, %arg1: i32, %arg2: i32, %arg3: i32) -> (i32, i32) {
    %c0_i32 = arith.constant 0 : i32
    %c0_i32_0 = arith.constant 0 : i32
    return %c0_i32, %arg2 : i32, i32
  }
  func.func @transform_3(%arg0: i32, %arg1: i32, %arg2: i32, %arg3: i32) -> (i32, i32, i32) {
    %c0_i32 = arith.constant 0 : i32
    return %arg0, %arg1, %arg2 : i32, i32, i32
  }
}

</mosaic_0001>

<bundles_post_ra>
// kernel: tpu_custom_call.1
= control target key start
LH: loop header
LB: loop body
LE: loop exit
PB: predicated region body
PF: predicated region fallthrough
CT: control target
= control target key end

     0   :  { %8 = vsyncpa [#allocation3], 0  ;;  %s475_s0 = inlined_call_operand.hbm [shape: bf16[1,48,128], index: 0, kind: input, shape index: {}]   ;;  %s476_s1 = inlined_call_operand.hbm [shape: bf16[1,128,128], index: 1, kind: input, shape index: {}]   ;;  %s477_s2 = inlined_call_operand.vmem [shape: f32[1,128], index: 2, kind: input, shape index: {}]   ;;  %s478_s3 = inlined_call_operand.hbm [shape: bf16[1,48,128], index: 3, kind: output, shape index: {}]  }
   0x1   :  { %9 = vsyncpa [#allocation6], 0 }
   0x2   :  { %10 = vsyncpa [#allocation4], 0  ;;  %s424_s12 = smov [#allocation2]  }
   0x3   :  { %s16_s13 = sshll.u32 %s424_s12, 4  ;;  %s17_s13 = int_to_ptr.vmem [resolvable:$true] %s16_s13 }
   0x4   :  { %s366_s14 = scalar_lea.vmem %s17_s13, 384  ;;  %p371_p1 = scmp.lt.s32.totalorder %s17_s13, %s17_s13 }
   0x5   :  { %p367_p0 = scmp.ne.s32.totalorder %s17_s13, %s366_s14  ;;  %p372_p2 = scmp.lt.s32.totalorder %s366_s14, %s366_s14 }
   0x7   :  { %p373_p3 = por %p372_p2, %p371_p1 }
   0x9   :  { %p374_p4 = pnand %p373_p3, %p367_p0 }
   0xb   :  { %377 = shalt.err (!%p374_p4)
}
   0xc   :  { %s425_s15 = smov 64   ;;  %s426_s16 = smov 4  }
   0xd   :  { %22 = dma.hbm_to_vmem [thread:$0]  %s475_s0, 384, %s17_s13, [#allocation3], %s425_s15, %s425_s15, %s426_s16  }
   0xe   :  { %s427_s19 = smov [#allocation5]  }
   0xf   :  { %s28_s20 = sshll.u32 %s427_s19, 4  ;;  %s29_s20 = int_to_ptr.vmem [resolvable:$true] %s28_s20 }
  0x10   :  { %s386_s21 = scalar_lea.vmem %s29_s20, 1024  ;;  %p391_p6 = scmp.lt.s32.totalorder %s29_s20, %s29_s20 }
  0x11   :  { %p387_p5 = scmp.ne.s32.totalorder %s29_s20, %s386_s21  ;;  %p392_p7 = scmp.lt.s32.totalorder %s386_s21, %s386_s21 }
  0x13   :  { %p393_p8 = por %p392_p7, %p391_p6 }
  0x15   :  { %p394_p9 = pnand %p393_p8, %p387_p5 }
  0x17   :  { %397 = shalt.err (!%p394_p9)
}
  0x18   :  { %34 = dma.hbm_to_vmem [thread:$0]  %s476_s1, 1024, %s29_s20, [#allocation6], %s425_s15, %s425_s15, %s426_s16  }
  0x19   :  { %418 = dma.done.wait [#allocation3], 384  }
  0x1a   :  { %419 = vsyncadd [#allocation3], 4294966912 }
  0x1b   :  { %420 = dma.done.wait [#allocation6], 1024  }
  0x1c   :  { %421 = vsyncadd [#allocation6], 4294966272  ;;  %v428_v0 = vmov 0.0   ;;  %vm429_vm0 = vmmov 0   ;;  %v347_v1 = vld [vmem:[#allocation5 + $0x38] sm:$0xff]   ;;  %v348_v2 = vld [vmem:[#allocation5 + $0x30] sm:$0xff]  }
  0x1d   :  { %324 = vmatprep.subr.bf16.mxu1 %v428_v0  ;;  %296 = vmatprep.subr.bf16.mxu0 %v428_v0  ;;  %v349_v3 = vld [vmem:[#allocation5 + $0x28] sm:$0xff]   ;;  %v350_v4 = vld [vmem:[#allocation5 + $0x20] sm:$0xff]   ;;  %v351_v5 = vld [vmem:[#allocation5 + $0x18] sm:$0xff]   ;;  %s430_s24 = smov [#allocation7]  }
  0x1e   :  { %316 = vmatprep.mubr.msk.bf16.mxu1 %vm429_vm0, %v428_v0  ;;  %312 = vmatprep.mubr.msk.bf16.mxu0 %vm429_vm0, %v428_v0  ;;  %v352_v6 = vld [vmem:[#allocation5 + $0x10] sm:$0xff]   ;;  %v353_v7 = vld [vmem:[#allocation5 + $0x8] sm:$0xff]   ;;  %v354_v8 = vld [vmem:[#allocation5] sm:$0xff]   ;;  %s231_s25 = sshll.u32 %s430_s24, 4  ;;  %s232_s25 = int_to_ptr.vmem [resolvable:$true] %s231_s25 }
  0x1f   :  { %332 = vmatpush3.bf16.msra.mxu1 %v347_v1  ;;  %297 = vmatpush3.bf16.msra.mxu0 %v347_v1  ;;  %v355_v9 = vld [vmem:[#allocation2 + $0x8] sm:$0xff]   ;;  %v356_v10 = vld [vmem:[#allocation2] sm:$0xff]   ;;  %v357_v11 = vld [vmem:[#allocation2 + $0x10] sm:$0xff]   ;;  %p403_p11 = scmp.lt.s32.totalorder %s232_s25, %s232_s25 }
  0x20   :  { %325 = vmatprep.subr.bf16.mxu1 %v428_v0  ;;  %298 = vmatprep.subr.bf16.mxu0 %v428_v0  ;;  %v244_v14 = vld [vmem:[%s477_s2] ss:$0 sm:$0xff]  ;;  %s398_s2 = scalar_lea.vmem %s232_s25, 384 }
  0x21   :  { %p399_p10 = scmp.ne.s32.totalorder %s232_s25, %s398_s2  ;;  %p404_p12 = scmp.lt.s32.totalorder %s398_s2, %s398_s2 }
  0x23   :  { %333 = vmatpush3.bf16.msra.mxu1 %v348_v2  ;;  %299 = vmatpush3.bf16.msra.mxu0 %v348_v2  ;;  %p405_p13 = por %p404_p12, %p403_p11 }
  0x24   :  { %326 = vmatprep.subr.bf16.mxu1 %v428_v0  ;;  %300 = vmatprep.subr.bf16.mxu0 %v428_v0 }
  0x25   :  { %p406_p0 = pnand %p405_p13, %p399_p10 }
  0x27   :  { %334 = vmatpush3.bf16.msra.mxu1 %v349_v3  ;;  %301 = vmatpush3.bf16.msra.mxu0 %v349_v3 }
  0x28   :  { %327 = vmatprep.subr.bf16.mxu1 %v428_v0  ;;  %302 = vmatprep.subr.bf16.mxu0 %v428_v0 }
  0x2b   :  { %335 = vmatpush3.bf16.msra.mxu1 %v350_v4  ;;  %303 = vmatpush3.bf16.msra.mxu0 %v350_v4 }
  0x2c   :  { %328 = vmatprep.subr.bf16.mxu1 %v428_v0  ;;  %304 = vmatprep.subr.bf16.mxu0 %v428_v0 }
  0x2f   :  { %336 = vmatpush3.bf16.msra.mxu1 %v351_v5  ;;  %305 = vmatpush3.bf16.msra.mxu0 %v351_v5 }
  0x30   :  { %329 = vmatprep.subr.bf16.mxu1 %v428_v0  ;;  %306 = vmatprep.subr.bf16.mxu0 %v428_v0 }
  0x33   :  { %337 = vmatpush3.bf16.msra.mxu1 %v352_v6  ;;  %307 = vmatpush3.bf16.msra.mxu0 %v352_v6 }
  0x34   :  { %330 = vmatprep.subr.bf16.mxu1 %v428_v0  ;;  %308 = vmatprep.subr.bf16.mxu0 %v428_v0 }
  0x37   :  { %338 = vmatpush3.bf16.msra.mxu1 %v353_v7  ;;  %309 = vmatpush3.bf16.msra.mxu0 %v353_v7 }
  0x38   :  { %331 = vmatprep.subr.bf16.mxu1 %v428_v0  ;;  %310 = vmatprep.subr.bf16.mxu0 %v428_v0 }
  0x3b   :  { %339 = vmatpush3.bf16.msra.mxu1 %v354_v8  ;;  %311 = vmatpush3.bf16.msra.mxu0 %v354_v8 }
  0x3e   :  { %317 = vmatmul.mubr.bf16.vlgmr.msra.gmra.mxu1 %v355_v9  ;;  %313 = vmatmul.mubr.bf16.vlgmr.msra.gmra.mxu0 %v356_v10 }
  0x3f   :  { %320 = vmatprep.mubr.msk.bf16.mxu1 %vm429_vm0, %v428_v0 }
  0x46   :  { %321 = vmatmul.mubr.bf16.gmra.mxu1 %v357_v11 }
  0xfe   :  { %v181_v12 = vpop.f32.mrf.mxu1  ;;  %v173_v13 = vpop.f32.mrf.mxu0 }
  0xff   :  { %v174_v17 = vadd.f32 %v244_v14, %v173_v13  ;;  %v182_v20 = vadd.f32 %v244_v14, %v181_v12 }
 0x100   :  { %v318_v15 = vpop.f32.mrf.mxu1  ;;  %v314_v16 = vpop.f32.mrf.mxu0 }
 0x102   :  { %v184_v18 = vpop.f32.mrf.mxu1  ;;  %v176_v19 = vpop.f32.mrf.mxu0 }
 0x103   :  { %v185_v21 = vadd.f32 %v244_v14, %v184_v18  ;;  %v177_v22 = vadd.f32 %v244_v14, %v176_v19 }
 0x104   :  { %v319_v23 = vpop.f32.mrf.mxu1  ;;  %v315_v24 = vpop.f32.mrf.mxu0 }
 0x105   :  { %v276_v25 = vpack.c.bf16 %v185_v21, %v182_v20  ;;  %v271_v26 = vpack.c.bf16 %v177_v22, %v174_v17 }
 0x106   :  { %v189_v27 = vpop.f32.mrf.mxu1 }
 0x107   :  { %283 = vst [vmem:[#allocation7 + $0x8] sm:$0xff] %v276_v25   ;;  %272 = vst [vmem:[#allocation7] sm:$0xff] %v271_v26   ;;  %v190_v30 = vadd.f32 %v244_v14, %v189_v27 }
 0x108   :  { %v322_v28 = vpop.f32.mrf.mxu1 }
 0x10a   :  { %v192_v29 = vpop.f32.mrf.mxu1 }
 0x10b   :  { %v193_v31 = vadd.f32 %v244_v14, %v192_v29 }
 0x10c   :  { %v323_v32 = vpop.f32.mrf.mxu1 }
 0x10d   :  { %v281_v33 = vpack.c.bf16 %v193_v31, %v190_v30 }
 0x10f   :  { %284 = vst [vmem:[#allocation7 + $0x10] sm:$0xff] %v281_v33  }
 0x110   :  { %409 = shalt.err (!%p406_p0)
}
 0x111   :  { %237 = dma.vmem_to_hbm [thread:$0]  %s232_s25, 384, %s478_s3, [#allocation4], %s425_s15, %s425_s15, %s426_s16  }
 0x112   :  { %422 = dma.done.wait [#allocation4], 384  }
 0x113   :  { %423 = vsyncadd [#allocation4], 4294966912 }
 0x114   :  { %241 = vsyncpa [#allocation3], 1 }
 0x115   :  { %242 = vsyncpa [#allocation6], 1 }
 0x116   :  { %243 = vsyncpa [#allocation4], 1 }

</bundles_post_ra>
